<compile_context>
chip_gen: v7x
topology: tpu7x:2x2x1
jax: 0.10.0
libtpu: 0.0.40
codegen_flags: <defaults>
</compile_context>

<pallas_src>
import functools
import math

import jax
import jax.numpy as jnp
from jax import lax
from jax.experimental import pallas as pl
from jax.experimental.pallas import tpu as pltpu


# ---------------------------------------------------------------------------
# Kernels
# ---------------------------------------------------------------------------
def _layer_norm_kernel(x_ref, w_ref, b_ref, o_ref, *, eps):
    """Standard path: x_ref (block_rows, C); w_ref/b_ref (1, C) resident."""
    x = x_ref[...].astype(jnp.float32)
    # Two independent reductions -> both can use the XLUs concurrently and we
    # avoid a second VPU pass over centered data.
    mean = jnp.mean(x, axis=-1, keepdims=True)
    ex2 = jnp.mean(x * x, axis=-1, keepdims=True)
    var = jnp.maximum(ex2 - mean * mean, 0.0)
    inv = lax.rsqrt(var + eps)                       # EUP transcendental
    y = (x - mean) * inv
    y = y * w_ref[...].astype(jnp.float32) + b_ref[...].astype(jnp.float32)
    o_ref[...] = y.astype(o_ref.dtype)


def _layer_norm_packed_kernel(x_ref, w_ref, b_ref, o_ref, *, eps, feat, k):
    """Small-C path: each row of x_ref holds k independent feature rows of
    length `feat` packed along the 128-lane axis (k * feat == lane width)."""
    x = x_ref[...].astype(jnp.float32)               # (block_rows, k*feat)
    w = w_ref[...].astype(jnp.float32)               # (1, k*feat)
    b = b_ref[...].astype(jnp.float32)
    for s in range(k):                               # small static unroll
        lo = s * feat
        xs = x[:, lo:lo + feat]
        mean = jnp.mean(xs, axis=-1, keepdims=True)
        ex2 = jnp.mean(xs * xs, axis=-1, keepdims=True)
        var = jnp.maximum(ex2 - mean * mean, 0.0)
        inv = lax.rsqrt(var + eps)
        ys = (xs - mean) * inv * w[:, lo:lo + feat] + b[:, lo:lo + feat]
        o_ref[:, lo:lo + feat] = ys.astype(o_ref.dtype)


# ---------------------------------------------------------------------------
# Wrapper
# ---------------------------------------------------------------------------
def _vmem_capacity_bytes(default=64 * 1024 * 1024):
    try:
        info = pltpu.get_tpu_info()
        cap = getattr(info, "vmem_capacity_bytes", None)
        if cap:
            return int(cap)
    except Exception:
        pass
    return default


def _pick_block_rows(rows, feat, itemsize, mult, vmem_limit_bytes):
    """Largest row tile that fits the pipelined VMEM budget.

    Per-row footprint: double-buffered input + double-buffered output
    (4 * dtype bytes) plus ~3 f32 intermediates (upcast x, normalized, affine).
    """
    per_row = feat * (4 * itemsize + 3 * 4)
    budget = int(vmem_limit_bytes * 0.6)     # headroom for compiler scratch
    br = max(mult, budget // max(1, per_row))
    br = min(br, rows)
    # Megacore: keep >= 4 grid steps when each step still moves >= ~512 KiB,
    # so the "parallel" axis can be sharded across TensorCores (v7x: 2 TC/chip)
    # without drowning in the ~0.35 us fixed per-step overhead.
    quarter = pl.cdiv(rows, 4)
    if quarter * per_row >= (512 << 10):
        br = min(br, quarter)
    if br < rows:
        br = max((br // mult) * mult, mult)
    return br


def layer_norm(x, weight, bias=None, *, eps=1e-5, block_rows=None):
    """x: (..., C); weight: (C,); bias: (C,) or None. Same shape/dtype as x."""
    orig_shape = x.shape
    feat = orig_shape[-1]
    assert weight.shape == (feat,)
    if bias is None:
        bias = jnp.zeros((feat,), dtype=weight.dtype)
    assert bias.shape == (feat,)

    rows = math.prod(orig_shape[:-1]) if len(orig_shape) > 1 else 1
    x2 = x.reshape(rows, feat)

    # Small-C lane packing: pack k rows per 128-lane tile so loads/stores are
    # full-lane instead of masked partial accesses.
    packed = (feat < 128) and (128 % feat == 0) and (feat >= 8)
    if packed:
        k = 128 // feat
        groups = pl.cdiv(rows, k)
        pad = groups * k - rows
        if pad:
            x2 = jnp.pad(x2, ((0, pad), (0, 0)))
        x2 = x2.reshape(groups, k * feat)
        w2 = jnp.tile(weight.reshape(1, feat), (1, k))
        b2 = jnp.tile(bias.reshape(1, feat), (1, k))
        rows_eff, feat_eff = groups, k * feat
        kernel = functools.partial(
            _layer_norm_packed_kernel, eps=float(eps), feat=feat, k=k)
    else:
        # TODO(synk): when C is not a multiple of 128 the tail lanes of each
        # row are masked partial stores; acceptable for GPT-scale C (x128).
        w2 = weight.reshape(1, feat)
        b2 = bias.reshape(1, feat)
        rows_eff, feat_eff = rows, feat
        kernel = functools.partial(_layer_norm_kernel, eps=float(eps))

    itemsize = jnp.dtype(x.dtype).itemsize
    mult = 8 if itemsize >= 4 else (16 if itemsize == 2 else 32)

    # Per-generation VMEM budget: ~70% of physical (<= ~45 MiB on v7x,
    # ~90 MiB on v5e/v6e), never the full per-core capacity.
    vmem_cap = _vmem_capacity_bytes()
    vmem_limit = max(32 << 20, min(int(vmem_cap * 0.70), 100 << 20))

    if block_rows is None:
        br = _pick_block_rows(rows_eff, feat_eff, itemsize, mult, vmem_limit)
    else:
        br = min(int(block_rows), rows_eff)
        if br < rows_eff:
            br = max((br // mult) * mult, mult)

    grid = (pl.cdiv(rows_eff, br),)

    out = pl.pallas_call(
        kernel,
        out_shape=jax.ShapeDtypeStruct((rows_eff, feat_eff), x.dtype),
        grid_spec=pltpu.PrefetchScalarGridSpec(
            num_scalar_prefetch=0,
            grid=grid,
            in_specs=[
                pl.BlockSpec((br, feat_eff), lambda i: (i, 0)),   # activations
                pl.BlockSpec((1, feat_eff), lambda i: (0, 0)),    # gamma (resident)
                pl.BlockSpec((1, feat_eff), lambda i: (0, 0)),    # beta  (resident)
            ],
            out_specs=pl.BlockSpec((br, feat_eff), lambda i: (i, 0)),
        ),
        compiler_params=pltpu.CompilerParams(
            dimension_semantics=("parallel",),
            vmem_limit_bytes=int(vmem_limit),
        ),
    )(x2, w2, b2)

    if packed:
        out = out.reshape(rows_eff * (feat_eff // feat), feat)[:rows]
    return out.reshape(orig_shape)


# ---------------------------------------------------------------------------
# Reference & demo
# ---------------------------------------------------------------------------
def _ref_layer_norm(x, w, b, eps=1e-5):
    x32 = x.astype(jnp.float32)
    mean = jnp.mean(x32, axis=-1, keepdims=True)
    var = jnp.mean((x32 - mean) ** 2, axis=-1, keepdims=True)
    y = (x32 - mean) / jnp.sqrt(var + eps)
    y = y * w.astype(jnp.float32) + b.astype(jnp.float32)
    return y.astype(x.dtype)


if __name__ == "__main__":
    # GPT-style small shapes: batch=2, seq=8, hidden=32.
    batch, seq, hidden = 2, 8, 32
    eps = 1e-5

    key = jax.random.PRNGKey(0)
    k_x, k_w, k_b, k_x2, k_x3 = jax.random.split(key, 5)

    x = jax.random.normal(k_x, (batch, seq, hidden), dtype=jnp.float32)
    weight = jnp.ones((hidden,), dtype=jnp.float32)   # module init: ones
    bias = jnp.zeros((hidden,), dtype=jnp.float32)    # module init: zeros

    # 1) Default module parameters (packed small-C path, C=32).
    out = jax.block_until_ready(layer_norm(x, weight, bias, eps=eps))
    ref = _ref_layer_norm(x, weight, bias, eps=eps)
    assert out.shape == x.shape
    assert jnp.allclose(out, ref, atol=2e-5, rtol=2e-5)

    # 2) Trained (random) affine and bias=None path.
    w_rand = jax.random.normal(k_w, (hidden,), dtype=jnp.float32)
    b_rand = jax.random.normal(k_b, (hidden,), dtype=jnp.float32)
    out2 = jax.block_until_ready(layer_norm(x, w_rand, b_rand, eps=eps))
    assert jnp.allclose(out2, _ref_layer_norm(x, w_rand, b_rand, eps=eps),
                        atol=2e-5, rtol=2e-5)
    out3 = jax.block_until_ready(layer_norm(x, w_rand, None, eps=eps))
    assert jnp.allclose(
        out3,
        _ref_layer_norm(x, w_rand, jnp.zeros((hidden,), jnp.float32), eps=eps),
        atol=2e-5, rtol=2e-5)

    # 3) Ragged row count (exercises pad/slice of the packed path).
    x3 = jax.random.normal(k_x3, (3, 5, hidden), dtype=jnp.float32)
    out5 = jax.block_until_ready(layer_norm(x3, w_rand, b_rand, eps=eps))
    assert jnp.allclose(out5, _ref_layer_norm(x3, w_rand, b_rand, eps=eps),
                        atol=2e-5, rtol=2e-5)

    # 4) Lane-dense standard path (C multiple of 128).
    hidden2 = 128
    xb = jax.random.normal(k_x2, (batch, seq, hidden2), dtype=jnp.float32)
    wb = jnp.ones((hidden2,), jnp.float32)
    bb = jnp.zeros((hidden2,), jnp.float32)
    out4 = jax.block_until_ready(layer_norm(xb, wb, bb, eps=eps))
    assert jnp.allclose(out4, _ref_layer_norm(xb, wb, bb, eps=eps),
                        atol=2e-5, rtol=2e-5)

    print("KERNEL_OK")
</pallas_src>

<mosaic_0001>
module attributes {stable_mosaic.version = 11 : i64} {
  func.func @_layer_norm_packed_kernel(%arg0: i32, %arg1: memref<4x128xf32, #tpu.memory_space<vmem>>, %arg2: memref<1x128xf32, #tpu.memory_space<vmem>>, %arg3: memref<1x128xf32, #tpu.memory_space<vmem>>, %arg4: memref<4x128xf32, #tpu.memory_space<vmem>>) attributes {dimension_semantics = [#tpu.dimension_semantics<parallel>], iteration_bounds = array<i64: 1>, scalar_prefetch = 0 : i64, scratch_operands = 0 : i64, tpu.core_type = #tpu.core_type<tc>, window_params = [{transform_indices = @transform_0, window_bounds = array<i64: 4, 128>}, {pipeline_mode = #tpu.pipeline_mode<synchronous>, transform_indices = @transform_1, window_bounds = array<i64: 1, 128>}, {pipeline_mode = #tpu.pipeline_mode<synchronous>, transform_indices = @transform_2, window_bounds = array<i64: 1, 128>}, {transform_indices = @transform_3, window_bounds = array<i64: 4, 128>}]} {
    %c0 = arith.constant 0 : index
    %c0_0 = arith.constant 0 : index
    %0 = vector.load %arg1[%c0, %c0_0] : memref<4x128xf32, #tpu.memory_space<vmem>>, vector<4x128xf32>
    %c0_1 = arith.constant 0 : index
    %c0_2 = arith.constant 0 : index
    %1 = vector.load %arg2[%c0_1, %c0_2] : memref<1x128xf32, #tpu.memory_space<vmem>>, vector<1x128xf32>
    %c0_3 = arith.constant 0 : index
    %c0_4 = arith.constant 0 : index
    %2 = vector.load %arg3[%c0_3, %c0_4] : memref<1x128xf32, #tpu.memory_space<vmem>>, vector<1x128xf32>
    %3 = vector.extract_strided_slice %0 {offsets = [0, 0], sizes = [4, 32], strides = [1, 1]} : vector<4x128xf32> to vector<4x32xf32>
    %cst = arith.constant dense<0.000000e+00> : vector<4xf32>
    %4 = vector.multi_reduction <add>, %3, %cst [1] : vector<4x32xf32> to vector<4xf32>
    %5 = vector.shape_cast %4 : vector<4xf32> to vector<4x1xf32>
    %cst_5 = arith.constant 3.200000e+01 : f32
    %6 = vector.broadcast %cst_5 : f32 to vector<4x1xf32>
    %7 = arith.divf %5, %6 : vector<4x1xf32>
    %8 = arith.mulf %3, %3 : vector<4x32xf32>
    %cst_6 = arith.constant dense<0.000000e+00> : vector<4xf32>
    %9 = vector.multi_reduction <add>, %8, %cst_6 [1] : vector<4x32xf32> to vector<4xf32>
    %10 = vector.shape_cast %9 : vector<4xf32> to vector<4x1xf32>
    %cst_7 = arith.constant 3.200000e+01 : f32
    %11 = vector.broadcast %cst_7 : f32 to vector<4x1xf32>
    %12 = arith.divf %10, %11 : vector<4x1xf32>
    %13 = arith.mulf %7, %7 : vector<4x1xf32>
    %14 = arith.subf %12, %13 : vector<4x1xf32>
    %cst_8 = arith.constant 0.000000e+00 : f32
    %15 = vector.broadcast %cst_8 : f32 to vector<4x1xf32>
    %16 = arith.maximumf %14, %15 : vector<4x1xf32>
    %cst_9 = arith.constant 9.99999974E-6 : f32
    %17 = vector.broadcast %cst_9 : f32 to vector<4x1xf32>
    %18 = arith.addf %16, %17 : vector<4x1xf32>
    %19 = math.rsqrt %18 : vector<4x1xf32>
    %20 = vector.broadcast %7 : vector<4x1xf32> to vector<4x32xf32>
    %21 = arith.subf %3, %20 : vector<4x32xf32>
    %22 = vector.broadcast %19 : vector<4x1xf32> to vector<4x32xf32>
    %23 = arith.mulf %21, %22 : vector<4x32xf32>
    %24 = vector.extract_strided_slice %1 {offsets = [0, 0], sizes = [1, 32], strides = [1, 1]} : vector<1x128xf32> to vector<1x32xf32>
    %25 = vector.broadcast %24 : vector<1x32xf32> to vector<4x32xf32>
    %26 = arith.mulf %23, %25 : vector<4x32xf32>
    %27 = vector.extract_strided_slice %2 {offsets = [0, 0], sizes = [1, 32], strides = [1, 1]} : vector<1x128xf32> to vector<1x32xf32>
    %28 = vector.broadcast %27 : vector<1x32xf32> to vector<4x32xf32>
    %29 = arith.addf %26, %28 : vector<4x32xf32>
    %c0_10 = arith.constant 0 : index
    %c0_11 = arith.constant 0 : index
    %30 = vector.load %arg4[%c0_10, %c0_11] : memref<4x128xf32, #tpu.memory_space<vmem>>, vector<4x32xf32>
    tpu.vector_store %arg4[%c0_10, %c0_11], %29 {strides = array<i32>} : memref<4x128xf32, #tpu.memory_space<vmem>>, vector<4x32xf32>,
    %31 = vector.extract_strided_slice %0 {offsets = [0, 32], sizes = [4, 32], strides = [1, 1]} : vector<4x128xf32> to vector<4x32xf32>
    %cst_12 = arith.constant dense<0.000000e+00> : vector<4xf32>
    %32 = vector.multi_reduction <add>, %31, %cst_12 [1] : vector<4x32xf32> to vector<4xf32>
    %33 = vector.shape_cast %32 : vector<4xf32> to vector<4x1xf32>
    %cst_13 = arith.constant 3.200000e+01 : f32
    %34 = vector.broadcast %cst_13 : f32 to vector<4x1xf32>
    %35 = arith.divf %33, %34 : vector<4x1xf32>
    %36 = arith.mulf %31, %31 : vector<4x32xf32>
    %cst_14 = arith.constant dense<0.000000e+00> : vector<4xf32>
    %37 = vector.multi_reduction <add>, %36, %cst_14 [1] : vector<4x32xf32> to vector<4xf32>
    %38 = vector.shape_cast %37 : vector<4xf32> to vector<4x1xf32>
    %cst_15 = arith.constant 3.200000e+01 : f32
    %39 = vector.broadcast %cst_15 : f32 to vector<4x1xf32>
    %40 = arith.divf %38, %39 : vector<4x1xf32>
    %41 = arith.mulf %35, %35 : vector<4x1xf32>
    %42 = arith.subf %40, %41 : vector<4x1xf32>
    %cst_16 = arith.constant 0.000000e+00 : f32
    %43 = vector.broadcast %cst_16 : f32 to vector<4x1xf32>
    %44 = arith.maximumf %42, %43 : vector<4x1xf32>
    %cst_17 = arith.constant 9.99999974E-6 : f32
    %45 = vector.broadcast %cst_17 : f32 to vector<4x1xf32>
    %46 = arith.addf %44, %45 : vector<4x1xf32>
    %47 = math.rsqrt %46 : vector<4x1xf32>
    %48 = vector.broadcast %35 : vector<4x1xf32> to vector<4x32xf32>
    %49 = arith.subf %31, %48 : vector<4x32xf32>
    %50 = vector.broadcast %47 : vector<4x1xf32> to vector<4x32xf32>
    %51 = arith.mulf %49, %50 : vector<4x32xf32>
    %52 = vector.extract_strided_slice %1 {offsets = [0, 32], sizes = [1, 32], strides = [1, 1]} : vector<1x128xf32> to vector<1x32xf32>
    %53 = vector.broadcast %52 : vector<1x32xf32> to vector<4x32xf32>
    %54 = arith.mulf %51, %53 : vector<4x32xf32>
    %55 = vector.extract_strided_slice %2 {offsets = [0, 32], sizes = [1, 32], strides = [1, 1]} : vector<1x128xf32> to vector<1x32xf32>
    %56 = vector.broadcast %55 : vector<1x32xf32> to vector<4x32xf32>
    %57 = arith.addf %54, %56 : vector<4x32xf32>
    %c0_18 = arith.constant 0 : index
    %c32 = arith.constant 32 : index
    %58 = vector.load %arg4[%c0_18, %c32] : memref<4x128xf32, #tpu.memory_space<vmem>>, vector<4x32xf32>
    tpu.vector_store %arg4[%c0_18, %c32], %57 {strides = array<i32>} : memref<4x128xf32, #tpu.memory_space<vmem>>, vector<4x32xf32>,
    %59 = vector.extract_strided_slice %0 {offsets = [0, 64], sizes = [4, 32], strides = [1, 1]} : vector<4x128xf32> to vector<4x32xf32>
    %cst_19 = arith.constant dense<0.000000e+00> : vector<4xf32>
    %60 = vector.multi_reduction <add>, %59, %cst_19 [1] : vector<4x32xf32> to vector<4xf32>
    %61 = vector.shape_cast %60 : vector<4xf32> to vector<4x1xf32>
    %cst_20 = arith.constant 3.200000e+01 : f32
    %62 = vector.broadcast %cst_20 : f32 to vector<4x1xf32>
    %63 = arith.divf %61, %62 : vector<4x1xf32>
    %64 = arith.mulf %59, %59 : vector<4x32xf32>
    %cst_21 = arith.constant dense<0.000000e+00> : vector<4xf32>
    %65 = vector.multi_reduction <add>, %64, %cst_21 [1] : vector<4x32xf32> to vector<4xf32>
    %66 = vector.shape_cast %65 : vector<4xf32> to vector<4x1xf32>
    %cst_22 = arith.constant 3.200000e+01 : f32
    %67 = vector.broadcast %cst_22 : f32 to vector<4x1xf32>
    %68 = arith.divf %66, %67 : vector<4x1xf32>
    %69 = arith.mulf %63, %63 : vector<4x1xf32>
    %70 = arith.subf %68, %69 : vector<4x1xf32>
    %cst_23 = arith.constant 0.000000e+00 : f32
    %71 = vector.broadcast %cst_23 : f32 to vector<4x1xf32>
    %72 = arith.maximumf %70, %71 : vector<4x1xf32>
    %cst_24 = arith.constant 9.99999974E-6 : f32
    %73 = vector.broadcast %cst_24 : f32 to vector<4x1xf32>
    %74 = arith.addf %72, %73 : vector<4x1xf32>
    %75 = math.rsqrt %74 : vector<4x1xf32>
    %76 = vector.broadcast %63 : vector<4x1xf32> to vector<4x32xf32>
    %77 = arith.subf %59, %76 : vector<4x32xf32>
    %78 = vector.broadcast %75 : vector<4x1xf32> to vector<4x32xf32>
    %79 = arith.mulf %77, %78 : vector<4x32xf32>
    %80 = vector.extract_strided_slice %1 {offsets = [0, 64], sizes = [1, 32], strides = [1, 1]} : vector<1x128xf32> to vector<1x32xf32>
    %81 = vector.broadcast %80 : vector<1x32xf32> to vector<4x32xf32>
    %82 = arith.mulf %79, %81 : vector<4x32xf32>
    %83 = vector.extract_strided_slice %2 {offsets = [0, 64], sizes = [1, 32], strides = [1, 1]} : vector<1x128xf32> to vector<1x32xf32>
    %84 = vector.broadcast %83 : vector<1x32xf32> to vector<4x32xf32>
    %85 = arith.addf %82, %84 : vector<4x32xf32>
    %c0_25 = arith.constant 0 : index
    %c64 = arith.constant 64 : index
    %86 = vector.load %arg4[%c0_25, %c64] : memref<4x128xf32, #tpu.memory_space<vmem>>, vector<4x32xf32>
    tpu.vector_store %arg4[%c0_25, %c64], %85 {strides = array<i32>} : memref<4x128xf32, #tpu.memory_space<vmem>>, vector<4x32xf32>,
    %87 = vector.extract_strided_slice %0 {offsets = [0, 96], sizes = [4, 32], strides = [1, 1]} : vector<4x128xf32> to vector<4x32xf32>
    %cst_26 = arith.constant dense<0.000000e+00> : vector<4xf32>
    %88 = vector.multi_reduction <add>, %87, %cst_26 [1] : vector<4x32xf32> to vector<4xf32>
    %89 = vector.shape_cast %88 : vector<4xf32> to vector<4x1xf32>
    %cst_27 = arith.constant 3.200000e+01 : f32
    %90 = vector.broadcast %cst_27 : f32 to vector<4x1xf32>
    %91 = arith.divf %89, %90 : vector<4x1xf32>
    %92 = arith.mulf %87, %87 : vector<4x32xf32>
    %cst_28 = arith.constant dense<0.000000e+00> : vector<4xf32>
    %93 = vector.multi_reduction <add>, %92, %cst_28 [1] : vector<4x32xf32> to vector<4xf32>
    %94 = vector.shape_cast %93 : vector<4xf32> to vector<4x1xf32>
    %cst_29 = arith.constant 3.200000e+01 : f32
    %95 = vector.broadcast %cst_29 : f32 to vector<4x1xf32>
    %96 = arith.divf %94, %95 : vector<4x1xf32>
    %97 = arith.mulf %91, %91 : vector<4x1xf32>
    %98 = arith.subf %96, %97 : vector<4x1xf32>
    %cst_30 = arith.constant 0.000000e+00 : f32
    %99 = vector.broadcast %cst_30 : f32 to vector<4x1xf32>
    %100 = arith.maximumf %98, %99 : vector<4x1xf32>
    %cst_31 = arith.constant 9.99999974E-6 : f32
    %101 = vector.broadcast %cst_31 : f32 to vector<4x1xf32>
    %102 = arith.addf %100, %101 : vector<4x1xf32>
    %103 = math.rsqrt %102 : vector<4x1xf32>
    %104 = vector.broadcast %91 : vector<4x1xf32> to vector<4x32xf32>
    %105 = arith.subf %87, %104 : vector<4x32xf32>
    %106 = vector.broadcast %103 : vector<4x1xf32> to vector<4x32xf32>
    %107 = arith.mulf %105, %106 : vector<4x32xf32>
    %108 = vector.extract_strided_slice %1 {offsets = [0, 96], sizes = [1, 32], strides = [1, 1]} : vector<1x128xf32> to vector<1x32xf32>
    %109 = vector.broadcast %108 : vector<1x32xf32> to vector<4x32xf32>
    %110 = arith.mulf %107, %109 : vector<4x32xf32>
    %111 = vector.extract_strided_slice %2 {offsets = [0, 96], sizes = [1, 32], strides = [1, 1]} : vector<1x128xf32> to vector<1x32xf32>
    %112 = vector.broadcast %111 : vector<1x32xf32> to vector<4x32xf32>
    %113 = arith.addf %110, %112 : vector<4x32xf32>
    %c0_32 = arith.constant 0 : index
    %c96 = arith.constant 96 : index
    %114 = vector.load %arg4[%c0_32, %c96] : memref<4x128xf32, #tpu.memory_space<vmem>>, vector<4x32xf32>
    tpu.vector_store %arg4[%c0_32, %c96], %113 {strides = array<i32>} : memref<4x128xf32, #tpu.memory_space<vmem>>, vector<4x32xf32>,
    return
  }
  func.func @transform_0(%arg0: i32) -> (i32, i32) {
    %c0_i32 = arith.constant 0 : i32
    %c0_i32_0 = arith.constant 0 : i32
    return %arg0, %c0_i32 : i32, i32
  }
  func.func @transform_1(%arg0: i32) -> (i32, i32) {
    %c0_i32 = arith.constant 0 : i32
    %c0_i32_0 = arith.constant 0 : i32
    %c0_i32_1 = arith.constant 0 : i32
    return %c0_i32, %c0_i32_0 : i32, i32
  }
  func.func @transform_2(%arg0: i32) -> (i32, i32) {
    %c0_i32 = arith.constant 0 : i32
    %c0_i32_0 = arith.constant 0 : i32
    %c0_i32_1 = arith.constant 0 : i32
    return %c0_i32, %c0_i32_0 : i32, i32
  }
  func.func @transform_3(%arg0: i32) -> (i32, i32) {
    %c0_i32 = arith.constant 0 : i32
    %c0_i32_0 = arith.constant 0 : i32
    return %arg0, %c0_i32 : i32, i32
  }
}

</mosaic_0001>

<bundles_post_ra>
// kernel: tpu_custom_call.1
= control target key start
LH: loop header
LB: loop body
LE: loop exit
PB: predicated region body
PF: predicated region fallthrough
CT: control target
= control target key end

     0   :  { %8 = vsyncpa [#allocation3], 0  ;;  %s294_s0 = inlined_call_operand.hbm [shape: f32[4,128], index: 0, kind: input, shape index: {}]   ;;  %s295_s1 = inlined_call_operand.vmem [shape: f32[1,128], index: 1, kind: input, shape index: {}]   ;;  %s296_s2 = inlined_call_operand.vmem [shape: f32[1,128], index: 2, kind: input, shape index: {}]   ;;  %s297_s3 = inlined_call_operand.hbm [shape: f32[4,128], index: 3, kind: output, shape index: {}]  }
   0x1   :  { %9 = vsyncpa [#allocation4], 0  ;;  %s218_s12 = smov [#allocation2]   ;;  %s170_s16 = scalar_lea.hbm %s294_s0, 64 }
   0x2   :  { %s16_s13 = sshll.u32 %s218_s12, 4  ;;  %p171_p0 = scmp.ne.s32.totalorder %s294_s0, %s170_s16  ;;  %s17_s13 = int_to_ptr.vmem [resolvable:$true] %s16_s13 }
   0x3   :  { %p174_p1 = scmp.lt.u32.totalorder %s170_s16, %s294_s0 }
   0x5   :  { %p176_p2 = pnand %p174_p1, %p171_p0 }
   0x7   :  { %179 = shalt.err (!%p176_p2)
}
   0x8   :  { %s180_s21 = scalar_lea.vmem %s17_s13, 64  ;;  %p185_p4 = scmp.lt.s32.totalorder %s17_s13, %s17_s13 }
   0x9   :  { %p181_p3 = scmp.ne.s32.totalorder %s17_s13, %s180_s21  ;;  %p186_p5 = scmp.lt.s32.totalorder %s180_s21, %s180_s21 }
   0xb   :  { %p187_p6 = por %p186_p5, %p185_p4 }
   0xd   :  { %p188_p7 = pnand %p187_p6, %p181_p3 }
   0xf   :  { %191 = shalt.err (!%p188_p7)
}
  0x10   :  { %19 = dma.hbm_to_vmem [thread:$0]  %s294_s0, 64, %s17_s13, [#allocation3]  }
  0x11   :  { %214 = dma.done.wait [#allocation3], 64  }
  0x12   :  { %215 = vsyncadd [#allocation3], 4294967232  ;;  %vm30_vm0 = vcmask 257024   ;;  %v255_v0 = vld [vmem:[#allocation2] sm:$0xf]  ;;  %s219_s24 = smov 96  }
  0x13   :  { %v31_v1 = vsel %vm30_vm0, %v255_v0, 0.0  ;;  %64 = vrot.lane.b32.xlu1 %v255_v0, %s219_s24  ;;  %v36_v2 = vmul.f32 %v255_v0, %v255_v0  ;;  %s220_s25 = smov 64   ;;  %s221_s0 = smov 32   ;;  %v155_v26 = vld [vmem:[%s295_s1] ss:$0 sm:$0xff]  ;;  %vm88_vm1 = vcmask 519424  }
  0x14   :  { %32 = vadd.xlane.f32.xlu0 %v31_v1  ;;  %v156_v28 = vld [vmem:[%s296_s2] ss:$0 sm:$0xff]  ;;  %vm113_vm2 = vcmask 781824   ;;  %s222_s1 = smov [#allocation5]   ;;  %vm138_vm3 = vcmask 1044224  }
  0x15   :  { %v37_v3 = vsel %vm30_vm0, %v36_v2, 0.0  ;;  %s146_s2 = sshll.u32 %s222_s1, 4  ;;  %s147_s2 = int_to_ptr.vmem [resolvable:$true] %s146_s2 }
  0x16   :  { %s192_s30 = scalar_lea.vmem %s147_s2, 64  ;;  %p197_p9 = scmp.lt.s32.totalorder %s147_s2, %s147_s2 }
  0x17   :  { %90 = vrot.lane.b32.xlu1 %v255_v0, %s220_s25  ;;  %p193_p8 = scmp.ne.s32.totalorder %s147_s2, %s192_s30  ;;  %p198_p10 = scmp.lt.s32.totalorder %s192_s30, %s192_s30 }
  0x18   :  { %38 = vadd.xlane.f32.xlu0 %v37_v3 }
  0x19   :  { %p199_p11 = por %p198_p10, %p197_p9 }
  0x1b   :  { %115 = vrot.lane.b32.xlu1 %v255_v0, %s221_s0  ;;  %p200_p12 = pnand %p199_p11, %p193_p8 }
  0x1f   :  { %97 = vrot.lane.b32.xlu1 %v36_v2, %s220_s25 }
  0x23   :  { %122 = vrot.lane.b32.xlu1 %v36_v2, %s221_s0 }
  0x2e   :  { %72 = vrot.lane.b32.xlu0 %v36_v2, %s219_s24 }
  0x85   :  { %v65_v4 = vpop.permute.xlu1 %64 }
  0x86   :  { %v67_v5 = vsel %vm30_vm0, %v65_v4, 0.0 }
  0x87   :  { %68 = vadd.xlane.f32.xlu1 %v67_v5 }
  0x89   :  { %v91_v6 = vpop.permute.xlu1 %90 }
  0x8a   :  { %v93_v7 = vsel %vm30_vm0, %v91_v6, 0.0 }
  0x8b   :  { %94 = vadd.xlane.f32.xlu1 %v93_v7 }
  0x8d   :  { %v116_v8 = vpop.permute.xlu1 %115 }
  0x8e   :  { %v118_v23 = vsel %vm30_vm0, %v116_v8, 0.0 }
  0x91   :  { %v98_v9 = vpop.permute.xlu1 %97 }
  0x92   :  { %v100_v10 = vsel %vm30_vm0, %v98_v9, 0.0 }
  0x93   :  { %101 = vadd.xlane.f32.xlu1 %v100_v10 }
  0x95   :  { %v123_v11 = vpop.permute.xlu1 %122 }
  0x96   :  { %v125_v12 = vsel %vm30_vm0, %v123_v11, 0.0 }
  0x97   :  { %126 = vadd.xlane.f32.xlu1 %v125_v12 }
  0xa1   :  { %v33_v13 = vpop.xlane.xlu0 %32 }
  0xa2   :  { %v35_v14 = vmul.f32 0.03125, %v33_v13 }
  0xa4   :  { %v41_v16 = vmul.f32 %v35_v14, %v35_v14  ;;  %v46_v24 = vsub.f32 %v255_v0, %v35_v14 }
  0xa5   :  { %v39_v15 = vpop.xlane.xlu0 %38 }
  0xa6   :  { %v40_v17 = vmul.f32 0.03125, %v39_v15 }
  0xa8   :  { %v42_v18 = vsub.f32 %v40_v17, %v41_v16 }
  0xa9   :  { %v73_v19 = vpop.permute.xlu0 %72 }
  0xaa   :  { %v43_v20 = vmax.f32 %v42_v18, 0.0  ;;  %v75_v21 = vsel %vm30_vm0, %v73_v19, 0.0 }
  0xab   :  { %76 = vadd.xlane.f32.xlu0 %v75_v21 }
  0xac   :  { %v44_v22 = vadd.f32 1e-05, %v43_v20 }
  0xae   :  { %162 = vrsqrt.f32 %v44_v22 }
  0xaf   :  { %119 = vadd.xlane.f32.xlu0 %v118_v23 }
  0xb8   :  { %v163_v25 = vpop.eup %162 }
  0xb9   :  { %v47_v27 = vmul.f32 %v163_v25, %v46_v24 }
  0xbb   :  { %v54_v29 = vmul.f32 %v155_v26, %v47_v27 }
  0xbd   :  { %v61_v30 = vadd.f32 %v156_v28, %v54_v29 }
  0xbf   :  { %62 = vst.msk [vmem:[#allocation5] sm:$0xf] %vm30_vm0, %v61_v30 }
 0x114   :  { %v69_v31 = vpop.xlane.xlu1 %68 }
 0x115   :  { %v70_v39 = vmul.f32 0.03125, %v69_v31 }
 0x117   :  { %v79_v42 = vmul.f32 %v70_v39, %v70_v39  ;;  %v84_v58 = vsub.f32 %v255_v0, %v70_v39 }
 0x118   :  { %v95_v32 = vpop.xlane.xlu1 %94 }
 0x119   :  { %v96_v33 = vmul.f32 0.03125, %v95_v32 }
 0x11b   :  { %v104_v35 = vmul.f32 %v96_v33, %v96_v33  ;;  %v109_v54 = vsub.f32 %v255_v0, %v96_v33 }
 0x120   :  { %v102_v34 = vpop.xlane.xlu1 %101 }
 0x121   :  { %v103_v36 = vmul.f32 0.03125, %v102_v34 }
 0x123   :  { %v105_v37 = vsub.f32 %v103_v36, %v104_v35 }
 0x124   :  { %v127_v44 = vpop.xlane.xlu1 %126 }
 0x125   :  { %v106_v38 = vmax.f32 %v105_v37, 0.0  ;;  %v128_v49 = vmul.f32 0.03125, %v127_v44 }
 0x127   :  { %v107_v40 = vadd.f32 1e-05, %v106_v38 }
 0x129   :  { %164 = vrsqrt.f32 %v107_v40 }
 0x133   :  { %v165_v56 = vpop.eup %164 }
 0x134   :  { %v110_v57 = vmul.f32 %v165_v56, %v109_v54 }
 0x136   :  { %v111_v61 = vmul.f32 %v155_v26, %v110_v57 }
 0x138   :  { %v77_v41 = vpop.xlane.xlu0 %76  ;;  %v112_v3 = vadd.f32 %v156_v28, %v111_v61 }
 0x139   :  { %v78_v43 = vmul.f32 0.03125, %v77_v41 }
 0x13b   :  { %v80_v45 = vsub.f32 %v78_v43, %v79_v42 }
 0x13c   :  { %v120_v46 = vpop.xlane.xlu0 %119 }
 0x13d   :  { %v81_v47 = vmax.f32 %v80_v45, 0.0  ;;  %v121_v48 = vmul.f32 0.03125, %v120_v46 }
 0x13f   :  { %v82_v50 = vadd.f32 1e-05, %v81_v47  ;;  %v129_v51 = vmul.f32 %v121_v48, %v121_v48  ;;  %v134_v63 = vsub.f32 %v255_v0, %v121_v48 }
 0x141   :  { %166 = vrsqrt.f32 %v82_v50  ;;  %v130_v52 = vsub.f32 %v128_v49, %v129_v51 }
 0x143   :  { %v131_v53 = vmax.f32 %v130_v52, 0.0 }
 0x145   :  { %v132_v55 = vadd.f32 1e-05, %v131_v53 }
 0x147   :  { %168 = vrsqrt.f32 %v132_v55 }
 0x14b   :  { %v167_v59 = vpop.eup %166 }
 0x14c   :  { %v85_v60 = vmul.f32 %v167_v59, %v84_v58 }
 0x14e   :  { %v86_v62 = vmul.f32 %v155_v26, %v85_v60 }
 0x150   :  { %v87_v1 = vadd.f32 %v156_v28, %v86_v62 }
 0x151   :  { %v169_v2 = vpop.eup %168 }
 0x152   :  { %89 = vst.msk [vmem:[#allocation5] sm:$0xf] %vm88_vm1, %v87_v1  ;;  %v135_v4 = vmul.f32 %v169_v2, %v134_v63 }
 0x153   :  { %114 = vst.msk [vmem:[#allocation5] sm:$0xf] %vm113_vm2, %v112_v3 }
 0x154   :  { %v136_v5 = vmul.f32 %v155_v26, %v135_v4 }
 0x156   :  { %v137_v6 = vadd.f32 %v156_v28, %v136_v5 }
 0x158   :  { %139 = vst.msk [vmem:[#allocation5] sm:$0xf] %vm138_vm3, %v137_v6 }
 0x159   :  { %203 = shalt.err (!%p200_p12)
}
 0x15a   :  { %s204_s6 = scalar_lea.hbm %s297_s3, 64 }
 0x15b   :  { %p205_p13 = scmp.ne.s32.totalorder %s297_s3, %s204_s6  ;;  %p208_p0 = scmp.lt.u32.totalorder %s204_s6, %s297_s3 }
 0x15d   :  { %p210_p1 = pnand %p208_p0, %p205_p13 }
 0x15f   :  { %213 = shalt.err (!%p210_p1)
}
 0x160   :  { %149 = dma.vmem_to_hbm [thread:$0]  %s147_s2, 64, %s297_s3, [#allocation4]  }
 0x161   :  { %216 = dma.done.wait [#allocation4], 64  }
 0x162   :  { %217 = vsyncadd [#allocation4], 4294967232 }
 0x163   :  { %153 = vsyncpa [#allocation3], 1 }
 0x164   :  { %154 = vsyncpa [#allocation4], 1 }

</bundles_post_ra>
